<compile_context>
chip_gen: v7x
topology: tpu7x:2x2x1
jax: 0.10.0
libtpu: 0.0.40
codegen_flags: <defaults>
</compile_context>

<pallas_src>
import jax
import jax.numpy as jnp
import numpy as np
from jax.experimental import pallas as pl
from jax.experimental.pallas import tpu as pltpu


def _round_up(x, m):
    return ((x + m - 1) // m) * m


def _per_batch_row_vmem_bytes(NC, NO, itemsize):
    """Estimated VMEM bytes per batch row inside one tile.

    Counts: double-buffered native-dtype input rows, ~4 full-width f32
    temporaries (cast / shifted / exp / select), and ~10 lane-padded (rows, 1)
    column vectors (labels, weights, m, lse, sel, ce, ...).
    """
    no_pad = _round_up(NO, 128)
    return NC * no_pad * (2 * max(int(itemsize), 1) + 4 * 4) + NC * 128 * 4 * 10


def _choose_tile_batch(B, NC, NO, itemsize, budget_bytes=16 << 20):
    """Pick a batch tile TB whose real VMEM working set stays inside the budget."""
    per_row = _per_batch_row_vmem_bytes(NC, NO, itemsize)
    tb = budget_bytes // per_row
    tb = max(8, min(int(tb), 1024))
    tb = (tb // 8) * 8                        # keep sublanes full (TB*NC mult of 8)
    b_pad8 = _round_up(B, 8)
    tb = min(tb, b_pad8)                      # don't over-pad tiny batches
    # Keep at least two tiles when the batch allows it (v7x: 2 TensorCores).
    if b_pad8 >= 16:
        tb = min(tb, max(8, ((b_pad8 // 2) // 8) * 8))
    return tb


def _weighted_ce_kernel(yh_ref, y_ref, w_ref, out_ref):
    # yh_ref:  (R, NO)  native dtype logits, R = TB * NC
    # y_ref:   (R, 1)   int32 labels (repeated per classifier head)
    # w_ref:   (R, 1)   f32 gating weight per (batch row, head); 0 for padded rows
    # out_ref: (1, 1, 1) f32 per-tile partial sum of weight * CE
    logits = yh_ref[...].astype(jnp.float32)                     # (R, NO)
    labels = y_ref[...]                                          # (R, 1)
    w = w_ref[...]                                               # (R, 1)

    m = jnp.max(logits, axis=-1, keepdims=True)                  # (R, 1)
    shifted = logits - m                                         # one pass; reused below
    cls = jax.lax.broadcasted_iota(jnp.int32, shifted.shape, 1)  # (R, NO)
    sel = jnp.sum(jnp.where(cls == labels, shifted, 0.0),
                  axis=-1, keepdims=True)                        # shifted[label]
    lse = jnp.log(jnp.sum(jnp.exp(shifted), axis=-1, keepdims=True))
    ce = lse - sel                                               # (R, 1); the max cancels

    part = jnp.sum(w * ce, axis=0, keepdims=True)                # (1, 1)
    out_ref[...] = part[None]                                    # (1, 1, 1)


def early_exit_gate_loss(ys, y_hats, exit_confidences, costs, alpha=0.5, *,
                         tile_batch=None):
    assert 0.0 <= alpha <= 1.0, "alpha must be between 0 and 1 (inclusive)"
    B, NC, NO = y_hats.shape
    assert NC >= 2, "need at least one exit classifier plus the final head"
    NE = NC - 1
    itemsize = jnp.dtype(y_hats.dtype).itemsize

    if tile_batch is None:
        TB = _choose_tile_batch(B, NC, NO, itemsize)
    else:
        TB = max(8, (int(tile_batch) // 8) * 8)

    per_row = _per_batch_row_vmem_bytes(NC, NO, itemsize)
    if TB * per_row > (28 << 20):
        # TODO(synk): add a class-axis (NO) grid dimension with online logsumexp
        # so very large vocabularies don't need a full row of logits in VMEM.
        raise ValueError(
            f"estimated VMEM working set {TB * per_row / 2**20:.1f} MiB exceeds "
            "the 28 MiB budget; reduce tile_batch or add a class-axis grid.")

    num_tiles = pl.cdiv(B, TB)
    B_pad = num_tiles * TB

    # ---- tiny O(B*NC) math stays in plain JAX (wrapper) ----
    g = exit_confidences.reshape(B, NE).astype(jnp.float32)
    one_minus = 1.0 - g
    excl = jnp.cumprod(
        jnp.concatenate([jnp.ones((B, 1), jnp.float32), one_minus[:, :-1]], axis=-1),
        axis=-1)                                                  # prod_{j<i}(1-g_j)
    weights = jnp.concatenate(
        [excl * g, jnp.prod(one_minus, axis=-1, keepdims=True)], axis=-1)  # (B, NC)
    costs_f = costs.astype(jnp.float32).reshape(1, NC)
    cost_sum = jnp.sum(weights * costs_f)                          # whole cost term in JAX

    # ---- flatten / pad the heavy operands for the kernel ----
    ys_i32 = ys.astype(jnp.int32).reshape(B)
    if B_pad != B:
        pad = B_pad - B
        y_hats = jnp.pad(y_hats, ((0, pad), (0, 0), (0, 0)))
        ys_i32 = jnp.pad(ys_i32, ((0, pad),))
        weights_pad = jnp.pad(weights, ((0, pad), (0, 0)))   # zero weight => zero contribution
    else:
        weights_pad = weights

    yh_flat = y_hats.reshape(B_pad * NC, NO)              # free: HBM already contiguous
    labels_flat = jnp.broadcast_to(ys_i32[:, None], (B_pad, NC)).reshape(B_pad * NC, 1)
    w_flat = weights_pad.reshape(B_pad * NC, 1)

    R = TB * NC
    cost_est = pl.CostEstimate(
        flops=int(6 * B_pad * NC * NO),
        transcendentals=int(B_pad * NC * (NO + 1)),
        bytes_accessed=int(B_pad * NC * NO * itemsize + B_pad * NC * 8 + num_tiles * 4),
    )

    gate_parts = pl.pallas_call(
        _weighted_ce_kernel,
        out_shape=jax.ShapeDtypeStruct((num_tiles, 1, 1), jnp.float32),
        grid_spec=pltpu.PrefetchScalarGridSpec(
            num_scalar_prefetch=0,
            grid=(num_tiles,),
            in_specs=[
                pl.BlockSpec((R, NO), lambda i: (i, 0)),   # logits tile (native dtype)
                pl.BlockSpec((R, 1), lambda i: (i, 0)),    # labels (repeated per head)
                pl.BlockSpec((R, 1), lambda i: (i, 0)),    # per-row gating weights
            ],
            out_specs=pl.BlockSpec((1, 1, 1), lambda i: (i, 0, 0)),
        ),
        compiler_params=pltpu.CompilerParams(
            dimension_semantics=("parallel",),             # independent tiles -> both TCs on v7x
            vmem_limit_bytes=32 * 1024 * 1024,             # safe on v5e/v6e (128 MiB) & v7x (64 MiB)
        ),
        cost_estimate=cost_est,
    )(yh_flat, labels_flat, w_flat)

    gate_sum = jnp.sum(gate_parts)                          # num_tiles-element reduce in JAX
    gate_term = (1.0 - alpha) * (gate_sum / B)
    cost_term = alpha * (cost_sum / B)
    return gate_term + cost_term, gate_term, cost_term


def _reference(ys, y_hats, g, costs, alpha=0.5):
    """Pure-JAX re-implementation of the PyTorch forward, for checking."""
    B, NC, NO = y_hats.shape
    logp = jax.nn.log_softmax(y_hats.astype(jnp.float32), axis=-1)
    ce = -jnp.take_along_axis(logp, ys.astype(jnp.int32)[:, None, None], axis=-1)[..., 0]
    g = g.astype(jnp.float32)
    one_minus = 1.0 - g
    excl = jnp.cumprod(
        jnp.concatenate([jnp.ones((B, 1), jnp.float32), one_minus[:, :-1]], axis=-1),
        axis=-1)                                                       # (B, NE)
    weights = jnp.concatenate(
        [excl * g, jnp.prod(one_minus, axis=-1, keepdims=True)], axis=-1)  # (B, NC)
    costs_f = costs.astype(jnp.float32).reshape(1, NC)
    gate_sum = jnp.sum(weights * ce)
    cost_sum = jnp.sum(weights * costs_f)
    gate_term = (1.0 - alpha) * gate_sum / B
    cost_term = alpha * cost_sum / B
    return gate_term + cost_term, gate_term, cost_term


if __name__ == "__main__":
    keys = jax.random.split(jax.random.PRNGKey(0), 8)

    # Case 1: small module-consistent shapes (batch=2, 3 heads => 2 exits, 8 classes).
    B, NC, NO = 2, 3, 8
    ys = jax.random.randint(keys[0], (B,), 0, NO)
    y_hats = jax.random.normal(keys[1], (B, NC, NO), jnp.float32)
    exit_conf = jax.random.uniform(keys[2], (B, NC - 1), jnp.float32)
    costs = jax.random.uniform(keys[3], (NC,), jnp.float32)

    out = early_exit_gate_loss(ys, y_hats, exit_conf, costs, alpha=0.5)
    jax.block_until_ready(out)
    ref = _reference(ys, y_hats, exit_conf, costs, alpha=0.5)
    for a, b in zip(out, ref):
        np.testing.assert_allclose(np.array(a), np.array(b), rtol=1e-5, atol=1e-5)

    # Case 2: batch not divisible by the tile, multiple grid steps, alpha != 0.5.
    B2, NC2, NO2 = 10, 4, 16
    ys2 = jax.random.randint(keys[4], (B2,), 0, NO2)
    y_hats2 = jax.random.normal(keys[5], (B2, NC2, NO2), jnp.float32)
    conf2 = jax.random.uniform(keys[6], (B2, NC2 - 1), jnp.float32)
    costs2 = jax.random.uniform(keys[7], (NC2,), jnp.float32)

    out2 = early_exit_gate_loss(ys2, y_hats2, conf2, costs2, alpha=0.3, tile_batch=8)
    jax.block_until_ready(out2)
    ref2 = _reference(ys2, y_hats2, conf2, costs2, alpha=0.3)
    for a, b in zip(out2, ref2):
        np.testing.assert_allclose(np.array(a), np.array(b), rtol=1e-5, atol=1e-5)

    print("KERNEL_OK")
</pallas_src>

<mosaic_0001>
module attributes {stable_mosaic.version = 11 : i64} {
  func.func @_weighted_ce_kernel(%arg0: i32, %arg1: memref<24x8xf32, #tpu.memory_space<vmem>>, %arg2: memref<24x1xi32, #tpu.memory_space<vmem>>, %arg3: memref<24x1xf32, #tpu.memory_space<vmem>>, %arg4: memref<1x1x1xf32, #tpu.memory_space<vmem>>) attributes {dimension_semantics = [#tpu.dimension_semantics<parallel>], iteration_bounds = array<i64: 1>, scalar_prefetch = 0 : i64, scratch_operands = 0 : i64, tpu.core_type = #tpu.core_type<tc>, window_params = [{transform_indices = @transform_0, window_bounds = array<i64: 24, 8>}, {transform_indices = @transform_1, window_bounds = array<i64: 24, 1>}, {transform_indices = @transform_2, window_bounds = array<i64: 24, 1>}, {transform_indices = @transform_3, window_bounds = array<i64: 1, 1, 1>}]} {
    %c0 = arith.constant 0 : index
    %c0_0 = arith.constant 0 : index
    %0 = vector.load %arg1[%c0, %c0_0] : memref<24x8xf32, #tpu.memory_space<vmem>>, vector<24x8xf32>
    %c0_1 = arith.constant 0 : index
    %c0_2 = arith.constant 0 : index
    %1 = vector.load %arg2[%c0_1, %c0_2] : memref<24x1xi32, #tpu.memory_space<vmem>>, vector<24x1xi32>
    %c0_3 = arith.constant 0 : index
    %c0_4 = arith.constant 0 : index
    %2 = vector.load %arg3[%c0_3, %c0_4] : memref<24x1xf32, #tpu.memory_space<vmem>>, vector<24x1xf32>
    %cst = arith.constant dense<0xFF800000> : vector<24xf32>
    %3 = vector.multi_reduction <maximumf>, %0, %cst [1] : vector<24x8xf32> to vector<24xf32>
    %4 = vector.shape_cast %3 : vector<24xf32> to vector<24x1xf32>
    %5 = vector.broadcast %4 : vector<24x1xf32> to vector<24x8xf32>
    %6 = arith.subf %0, %5 : vector<24x8xf32>
    %7 = tpu.iota {dimensions = array<i32: 1>} : vector<24x8xi32>
    %8 = vector.broadcast %1 : vector<24x1xi32> to vector<24x8xi32>
    %9 = arith.cmpi eq, %7, %8 : vector<24x8xi32>
    %cst_5 = arith.constant 0.000000e+00 : f32
    %10 = vector.broadcast %cst_5 : f32 to vector<24x8xf32>
    %11 = arith.select %9, %6, %10 : vector<24x8xi1>, vector<24x8xf32>
    %cst_6 = arith.constant dense<0.000000e+00> : vector<24xf32>
    %12 = vector.multi_reduction <add>, %11, %cst_6 [1] : vector<24x8xf32> to vector<24xf32>
    %13 = vector.shape_cast %12 : vector<24xf32> to vector<24x1xf32>
    %14 = math.exp %6 : vector<24x8xf32>
    %cst_7 = arith.constant dense<0.000000e+00> : vector<24xf32>
    %15 = vector.multi_reduction <add>, %14, %cst_7 [1] : vector<24x8xf32> to vector<24xf32>
    %16 = vector.shape_cast %15 : vector<24xf32> to vector<24x1xf32>
    %17 = math.log %16 : vector<24x1xf32>
    %18 = arith.subf %17, %13 : vector<24x1xf32>
    %19 = arith.mulf %2, %18 : vector<24x1xf32>
    %cst_8 = arith.constant dense<0.000000e+00> : vector<1xf32>
    %20 = vector.multi_reduction <add>, %19, %cst_8 [0] : vector<24x1xf32> to vector<1xf32>
    %21 = vector.shape_cast %20 : vector<1xf32> to vector<1x1xf32>
    %22 = vector.shape_cast %21 : vector<1x1xf32> to vector<1x1x1xf32>
    %c0_9 = arith.constant 0 : index
    %c0_10 = arith.constant 0 : index
    %c0_11 = arith.constant 0 : index
    %23 = vector.load %arg4[%c0_9, %c0_10, %c0_11] : memref<1x1x1xf32, #tpu.memory_space<vmem>>, vector<1x1x1xf32>
    tpu.vector_store %arg4[%c0_9, %c0_10, %c0_11], %22 {strides = array<i32>} : memref<1x1x1xf32, #tpu.memory_space<vmem>>, vector<1x1x1xf32>,
    return
  }
  func.func @transform_0(%arg0: i32) -> (i32, i32) {
    %c0_i32 = arith.constant 0 : i32
    %c0_i32_0 = arith.constant 0 : i32
    return %arg0, %c0_i32 : i32, i32
  }
  func.func @transform_1(%arg0: i32) -> (i32, i32) {
    %c0_i32 = arith.constant 0 : i32
    %c0_i32_0 = arith.constant 0 : i32
    return %arg0, %c0_i32 : i32, i32
  }
  func.func @transform_2(%arg0: i32) -> (i32, i32) {
    %c0_i32 = arith.constant 0 : i32
    %c0_i32_0 = arith.constant 0 : i32
    return %arg0, %c0_i32 : i32, i32
  }
  func.func @transform_3(%arg0: i32) -> (i32, i32, i32) {
    %c0_i32 = arith.constant 0 : i32
    %c0_i32_0 = arith.constant 0 : i32
    %c0_i32_1 = arith.constant 0 : i32
    return %arg0, %c0_i32, %c0_i32_0 : i32, i32, i32
  }
}

</mosaic_0001>

<bundles_post_ra>
// kernel: tpu_custom_call.1
= control target key start
LH: loop header
LB: loop body
LE: loop exit
PB: predicated region body
PF: predicated region fallthrough
CT: control target
= control target key end

     0   :  { %vm24_vm0 = vcmask 64512   ;;  %v158_v5 = vmov 0   ;;  %s228_s0 = inlined_call_operand.vmem [shape: f32[24,8], index: 0, kind: input, shape index: {}]   ;;  %s229_s1 = inlined_call_operand.vmem [shape: s32[24,1], index: 1, kind: input, shape index: {}]   ;;  %s230_s2 = inlined_call_operand.vmem [shape: f32[24,1], index: 2, kind: input, shape index: {}]   ;;  %s231_s3 = inlined_call_operand.hbm [shape: f32[1,1,1], index: 3, kind: output, shape index: {}]  }
   0x1   :  { %v17_v0 = vld [vmem:[%s228_s0 + $0x10] sm:$0xff]  ;;  %v15_v1 = vld [vmem:[%s228_s0] sm:$0xff]  ;;  %v16_v2 = vld [vmem:[%s228_s0 + $0x8] sm:$0xff]  ;;  %120 = vset.pattern.permute.xlu1 %v158_v5  ;;  %121 = vset.pattern.permute.xlu0 %v158_v5 }
   0x2   :  { %v31_v3 = vsel %vm24_vm0, %v17_v0, -inf  ;;  %v25_v4 = vsel %vm24_vm0, %v15_v1, -inf }
   0x3   :  { %32 = vmax.xlane.f32.xlu1 %v31_v3  ;;  %26 = vmax.xlane.f32.xlu0 %v25_v4 }
   0x4   :  { %8 = vsyncpa [#allocation3], 0  ;;  %v28_v6 = vsel %vm24_vm0, %v16_v2, -inf  ;;  %v18_v7 = vld [vmem:[%s229_s1] sm:$0xff]  ;;  %v20_v8 = vld [vmem:[%s229_s1 + $0x10] sm:$0xff]  ;;  %v37_v19 = vlaneseq  ;;  %vm90_vm4 = vcmask 7168  }
   0x5   :  { %v19_v9 = vld [vmem:[%s229_s1 + $0x8] sm:$0xff]  ;;  %v21_v44 = vld [vmem:[%s230_s2] sm:$0xff]  ;;  %v23_v53 = vld [vmem:[%s230_s2 + $0x10] sm:$0xff]  ;;  %s159_s28 = smov [#allocation2]   ;;  %vm102_vm5 = vcmask 0  }
   0x6   :  { %v38_v21 = vand.u32 127, %v37_v19  ;;  %v22_v48 = vld [vmem:[%s230_s2 + $0x8] sm:$0xff]  ;;  %s110_s29 = sshll.u32 %s159_s28, 4  ;;  %s111_s29 = int_to_ptr.vmem [resolvable:$true] %s110_s29 }
   0x7   :  { %29 = vmax.xlane.f32.xlu0 %v28_v6  ;;  %s134_s2 = scalar_lea.vmem %s111_s29, 16  ;;  %s138_s30 = scalar_lea.vmem %s111_s29, 32 }
   0x8   :  { %p135_p0 = scmp.ne.s32.totalorder %s111_s29, %s134_s2  ;;  %p139_p1 = scmp.lt.s32.totalorder %s111_s29, %s111_s29 }
   0x9   :  { %p140_p2 = scmp.lt.s32.totalorder %s138_s30, %s134_s2 }
   0xb   :  { %p141_p3 = por %p140_p2, %p139_p1 }
   0xd   :  { %p142_p4 = pnand %p141_p3, %p135_p0 }
  0x14   :  { %40 = vperm.xlu1 %120, %v18_v7  }
  0x18   :  { %46 = vperm.xlu1 %120, %v20_v8  }
  0x1d   :  { %43 = vperm.xlu0 %121, %v19_v9  }
  0x90   :  { %v33_v10 = vpop.xlane.xlu1 %32  ;;  %v27_v11 = vpop.xlane.xlu0 %26 }
  0x91   :  { %v36_v12 = vsub.f32 %v17_v0, %v33_v10  ;;  %v34_v13 = vsub.f32 %v15_v1, %v27_v11 }
  0x93   :  { %v67_v14 = vmul.f32 1.442695, %v36_v12  ;;  %v63_v15 = vmul.f32 1.442695, %v34_v13 }
  0x94   :  { %v30_v16 = vpop.xlane.xlu0 %29  ;;  %v41_v23 = vpop.permute.xlu1 %40 }
  0x95   :  { %122 = vpow2.f32 %v67_v14  ;;  %v35_v17 = vsub.f32 %v16_v2, %v30_v16  ;;  %vm48_vm1 = vcmp.eq.s32.totalorder %v38_v21, %v41_v23 }
  0x96   :  { %124 = vpow2.f32 %v63_v15  ;;  %v51_v29 = vsel %vm48_vm1, %v34_v13, 0.0 }
  0x97   :  { %v65_v18 = vmul.f32 1.442695, %v35_v17  ;;  %v54_v31 = vsel %vm24_vm0, %v51_v29, 0.0 }
  0x98   :  { %v47_v30 = vpop.permute.xlu1 %46 }
  0x99   :  { %126 = vpow2.f32 %v65_v18  ;;  %vm50_vm3 = vcmp.eq.s32.totalorder %v38_v21, %v47_v30 }
  0x9a   :  { %v53_v34 = vsel %vm50_vm3, %v36_v12, 0.0 }
  0x9b   :  { %v60_v35 = vsel %vm24_vm0, %v53_v34, 0.0 }
  0x9c   :  { %v44_v27 = vpop.permute.xlu0 %43 }
  0x9d   :  { %vm49_vm2 = vcmp.eq.s32.totalorder %v38_v21, %v44_v27 }
  0x9e   :  { %v52_v32 = vsel %vm49_vm2, %v35_v17, 0.0 }
  0x9f   :  { %v123_v20 = vpop.eup %122  ;;  %v57_v33 = vsel %vm24_vm0, %v52_v32, 0.0 }
  0xa0   :  { %v125_v22 = vpop.eup %124  ;;  %v75_v26 = vsel %vm24_vm0, %v123_v20, 0.0 }
  0xa1   :  { %v69_v24 = vsel %vm24_vm0, %v125_v22, 0.0 }
  0xa2   :  { %70 = vadd.xlane.f32.xlu1 %v69_v24 }
  0xa3   :  { %v127_v25 = vpop.eup %126 }
  0xa4   :  { %v72_v28 = vsel %vm24_vm0, %v127_v25, 0.0 }
  0xa5   :  { %73 = vadd.xlane.f32.xlu0 %v72_v28 }
  0xa6   :  { %76 = vadd.xlane.f32.xlu1 %v75_v26 }
  0xaa   :  { %55 = vadd.xlane.f32.xlu1 %v54_v31 }
  0xae   :  { %58 = vadd.xlane.f32.xlu1 %v57_v33 }
  0xb2   :  { %61 = vadd.xlane.f32.xlu1 %v60_v35 }
 0x12f   :  { %v71_v36 = vpop.xlane.xlu1 %70 }
 0x130   :  { %128 = vlog2.f32 %v71_v36 }
 0x132   :  { %v74_v37 = vpop.xlane.xlu0 %73 }
 0x133   :  { %v77_v38 = vpop.xlane.xlu1 %76  ;;  %130 = vlog2.f32 %v74_v37 }
 0x134   :  { %132 = vlog2.f32 %v77_v38 }
 0x137   :  { %v56_v39 = vpop.xlane.xlu1 %55 }
 0x13a   :  { %v129_v40 = vpop.eup %128 }
 0x13b   :  { %v79_v41 = vmul.f32 0.6931472, %v129_v40  ;;  %v59_v42 = vpop.xlane.xlu1 %58 }
 0x13d   :  { %v131_v43 = vpop.eup %130  ;;  %v84_v45 = vsub.f32 %v79_v41, %v56_v39 }
 0x13e   :  { %v133_v46 = vpop.eup %132  ;;  %v81_v47 = vmul.f32 0.6931472, %v131_v43 }
 0x13f   :  { %v83_v49 = vmul.f32 0.6931472, %v133_v46  ;;  %v62_v50 = vpop.xlane.xlu1 %61  ;;  %v87_v51 = vmul.f32 %v84_v45, %v21_v44 }
 0x140   :  { %v85_v52 = vsub.f32 %v81_v47, %v59_v42 }
 0x141   :  { %v86_v54 = vsub.f32 %v83_v49, %v62_v50  ;;  %v91_v57 = vsel %vm90_vm4, %v87_v51, 0.0 }
 0x142   :  { %v88_v55 = vmul.f32 %v85_v52, %v22_v48 }
 0x143   :  { %v89_v56 = vmul.f32 %v86_v54, %v23_v53 }
 0x144   :  { %v92_v58 = vsel %vm90_vm4, %v88_v55, 0.0 }
 0x145   :  { %v93_v59 = vadd.f32 %v92_v58, %v91_v57  ;;  %v94_v60 = vsel %vm90_vm4, %v89_v56, 0.0 }
 0x147   :  { %v95_v61 = vadd.f32 %v94_v60, %v93_v59 }
 0x149   :  { %v96_v62 = vrot.slane %v95_v61, 4 }
 0x14b   :  { %v97_v63 = vadd.f32 %v96_v62, %v95_v61 }
 0x14d   :  { %v98_v0 = vrot.slane %v97_v63, 2 }
 0x14f   :  { %v99_v1 = vadd.f32 %v98_v0, %v97_v63 }
 0x151   :  { %v100_v2 = vrot.slane %v99_v1, 1 }
 0x153   :  { %v101_v3 = vadd.f32 %v100_v2, %v99_v1 }
 0x155   :  { %103 = vst.msk [vmem:[#allocation2] sm:$0x1] %vm102_vm5, %v101_v3 }
 0x156   :  { %145 = shalt.err (!%p142_p4)
}
 0x157   :  { %s146_s6 = scalar_lea.hbm %s231_s3, 16 }
 0x158   :  { %p147_p5 = scmp.ne.s32.totalorder %s231_s3, %s146_s6  ;;  %p150_p6 = scmp.lt.u32.totalorder %s146_s6, %s231_s3 }
 0x15a   :  { %p152_p7 = pnand %p150_p6, %p147_p5 }
 0x15c   :  { %155 = shalt.err (!%p152_p7)
}
 0x15d   :  { %113 = dma.vmem_to_hbm [thread:$0]  %s111_s29, 16, %s231_s3, [#allocation3]  }
 0x15e   :  { %156 = dma.done.wait [#allocation3], 16  }
 0x15f   :  { %157 = vsyncadd [#allocation3], 4294967280 }
 0x160   :  { %117 = vsyncpa [#allocation3], 1 }

</bundles_post_ra>
